<compile_context>
chip_gen: v7x
topology: tpu7x:2x2x1
jax: 0.10.0
libtpu: 0.0.40
codegen_flags: <defaults>
</compile_context>

<pallas_src>
import functools

import jax
import jax.numpy as jnp
import numpy as np
from jax.experimental import pallas as pl
from jax.experimental.pallas import tpu as pltpu


# --------------------------------------------------------------------------- #
# Primary single-pass kernel: whole (Bn, C, HW) slab resident in VMEM.
# --------------------------------------------------------------------------- #
def _se_kernel(x_ref, w1t_ref, b1_ref, w2_ref, b2_ref, o_ref):
    # x_ref: (Bn, C, HW)   w1t_ref: (C, S)   b1_ref: (1, S)
    # w2_ref: (C, S)       b2_ref: (C, 1)    o_ref: (Bn, C, HW)
    x = x_ref[...]
    xf = x.astype(jnp.float32)

    # adaptive_avg_pool2d -> per-channel mean over the spatial (lane) axis.
    pooled = jnp.mean(xf, axis=-1, keepdims=True)                       # (Bn, C, 1)

    # se1: 1x1 conv C->S, ReLU.  Tiny mat-vec -> broadcast-multiply + sublane
    # reduce on VPU/XLU (MXU not worthwhile at these sizes).
    h = jnp.sum(w1t_ref[...][None, :, :] * pooled, axis=1, keepdims=True)
    h = h + b1_ref[...][None, :, :]                                     # (Bn, 1, S)
    h = jnp.maximum(h, 0.0)

    # se2: 1x1 conv S->C, sigmoid.
    g = jnp.sum(w2_ref[...][None, :, :] * h, axis=-1, keepdims=True)
    g = g + b2_ref[...][None, :, :]                                     # (Bn, C, 1)
    g = jax.nn.sigmoid(g)

    # Channel-wise gating (f32), cast back to the output dtype.
    o_ref[...] = (xf * g).astype(o_ref.dtype)


# --------------------------------------------------------------------------- #
# Two-pass fallback for samples too large for one VMEM block.
# --------------------------------------------------------------------------- #
def _se_gate_kernel(hw_total, hw_tile, x_ref, w1t_ref, b1_ref, w2_ref, b2_ref,
                    g_ref, acc_ref):
    # Grid = (N, n_hw_tiles); HW axis is "arbitrary" (accumulated in scratch).
    t = pl.program_id(1)

    @pl.when(t == 0)
    def _():
        acc_ref[...] = jnp.zeros_like(acc_ref)

    xf = x_ref[...].astype(jnp.float32)                                 # (C, hw_tile)
    if hw_total % hw_tile != 0:
        # Mask the padded tail of the last (partial) tile out of the sum.
        col = jax.lax.broadcasted_iota(jnp.int32, xf.shape, 1) + t * hw_tile
        xf = jnp.where(col < hw_total, xf, 0.0)
    acc_ref[...] += jnp.sum(xf, axis=-1, keepdims=True)                 # (C, 1)

    @pl.when(t == pl.num_programs(1) - 1)
    def _():
        pooled = acc_ref[...] * (1.0 / hw_total)                        # (C, 1)
        h = jnp.sum(w1t_ref[...] * pooled, axis=0, keepdims=True) + b1_ref[...]
        h = jnp.maximum(h, 0.0)                                         # (1, S)
        g = jnp.sum(w2_ref[...] * h, axis=-1, keepdims=True) + b2_ref[...]
        g_ref[...] = jax.nn.sigmoid(g).astype(g_ref.dtype)              # (C, 1)


def _se_apply_kernel(x_ref, g_ref, o_ref):
    # x_ref: (C, hw_tile)   g_ref: (C, 1)   o_ref: (C, hw_tile)
    o_ref[...] = (x_ref[...].astype(jnp.float32) * g_ref[...]).astype(o_ref.dtype)


# --------------------------------------------------------------------------- #
# Tiling heuristics.
# --------------------------------------------------------------------------- #
def _pick_bn(n, sample_bytes, target_bytes):
    """Largest divisor of n with block <= target; prefer >=2 grid steps (v7x)."""
    divisors = sorted(d for d in range(1, n + 1) if n % d == 0)
    fit = [d for d in divisors if d * sample_bytes <= target_bytes] or [1]
    bn = max(fit)
    while bn > 1 and n // bn < 2:
        smaller = [d for d in fit if d < bn]
        if not smaller:
            break
        bn = max(smaller)
    return bn


def _pick_hw_tile(hw, c, itemsize, target_bytes):
    """Lane-dense (multiple-of-128) HW tile for the two-pass path."""
    if hw <= 128:
        return hw
    cols = max(128, (target_bytes // max(1, c * itemsize)) // 128 * 128)
    return hw if cols >= hw else cols


# --------------------------------------------------------------------------- #
# Forward wrapper.
# --------------------------------------------------------------------------- #
def se_forward(x_nchw, w1, b1, w2, b2, *,
               block_target_bytes=2 << 20,     # aim for ~2 MiB blocks
               max_block_bytes=6 << 20,        # 4x double-buffered ~24 MiB (v7x-safe)
               two_pass_tile_bytes=4 << 20,
               vmem_limit_bytes=40 * 1024 * 1024,
               donate_x=False,
               force_two_pass=False):
    """x_nchw: [N, C, H, W]; w1: [S, C, 1, 1]; b1: [S]; w2: [C, S, 1, 1]; b2: [C]."""
    N, C, H, W = x_nchw.shape
    S = w1.shape[0]
    HW = H * W

    x = x_nchw.reshape(N, C, HW)
    w1t = w1.reshape(S, C).T                 # (C, S) — transposed se1 weight
    b1r = b1.reshape(1, S)
    b2r = b2.reshape(C, 1)
    w2r = w2.reshape(C, S)

    elem = x.dtype.itemsize
    sample_bytes = C * HW * elem
    param_bytes = (2 * C * S + S + C) * 4
    cost = pl.CostEstimate(
        flops=2 * N * C * HW + 4 * N * C * S,
        transcendentals=N * C,
        bytes_accessed=2 * N * C * HW * elem + param_bytes,
    )

    if (not force_two_pass) and sample_bytes <= max_block_bytes:
        # ---------------- single-pass path: Bn samples per grid step --------
        bn = _pick_bn(N, sample_bytes, min(block_target_bytes, max_block_bytes))
        out = pl.pallas_call(
            _se_kernel,
            out_shape=jax.ShapeDtypeStruct((N, C, HW), x.dtype),
            grid_spec=pltpu.PrefetchScalarGridSpec(
                num_scalar_prefetch=0,
                grid=(N // bn,),
                in_specs=[
                    pl.BlockSpec((bn, C, HW), lambda n: (n, 0, 0)),
                    pl.BlockSpec((C, S), lambda n: (0, 0)),
                    pl.BlockSpec((1, S), lambda n: (0, 0)),
                    pl.BlockSpec((C, S), lambda n: (0, 0)),
                    pl.BlockSpec((C, 1), lambda n: (0, 0)),
                ],
                out_specs=pl.BlockSpec((bn, C, HW), lambda n: (n, 0, 0)),
            ),
            compiler_params=pltpu.CompilerParams(
                dimension_semantics=("parallel",),
                vmem_limit_bytes=vmem_limit_bytes,
            ),
            cost_estimate=cost,
            input_output_aliases=({0: 0} if donate_x else {}),
        )(x, w1t, b1r, w2r, b2r)
        return out.reshape(N, C, H, W)

    # ---------------- two-pass fallback: gate then apply ---------------------
    hw_tile = _pick_hw_tile(HW, C, elem, two_pass_tile_bytes)
    n_t = pl.cdiv(HW, hw_tile)

    g = pl.pallas_call(
        functools.partial(_se_gate_kernel, HW, hw_tile),
        out_shape=jax.ShapeDtypeStruct((N, C, 1), jnp.float32),
        grid_spec=pltpu.PrefetchScalarGridSpec(
            num_scalar_prefetch=0,
            grid=(N, n_t),
            in_specs=[
                pl.BlockSpec((pl.Squeezed(), C, hw_tile), lambda n, t: (n, 0, t)),
                pl.BlockSpec((C, S), lambda n, t: (0, 0)),
                pl.BlockSpec((1, S), lambda n, t: (0, 0)),
                pl.BlockSpec((C, S), lambda n, t: (0, 0)),
                pl.BlockSpec((C, 1), lambda n, t: (0, 0)),
            ],
            out_specs=pl.BlockSpec((pl.Squeezed(), C, 1), lambda n, t: (n, 0, 0)),
            scratch_shapes=[pltpu.VMEM((C, 1), jnp.float32)],
        ),
        compiler_params=pltpu.CompilerParams(
            dimension_semantics=("parallel", "arbitrary"),
            vmem_limit_bytes=vmem_limit_bytes,
        ),
        cost_estimate=pl.CostEstimate(
            flops=N * C * HW, transcendentals=N * C,
            bytes_accessed=N * C * HW * elem + N * C * 4 + param_bytes),
    )(x, w1t, b1r, w2r, b2r)

    out = pl.pallas_call(
        _se_apply_kernel,
        out_shape=jax.ShapeDtypeStruct((N, C, HW), x.dtype),
        grid_spec=pltpu.PrefetchScalarGridSpec(
            num_scalar_prefetch=0,
            grid=(N, n_t),
            in_specs=[
                pl.BlockSpec((pl.Squeezed(), C, hw_tile), lambda n, t: (n, 0, t)),
                pl.BlockSpec((pl.Squeezed(), C, 1), lambda n, t: (n, 0, 0)),
            ],
            out_specs=pl.BlockSpec((pl.Squeezed(), C, hw_tile), lambda n, t: (n, 0, t)),
        ),
        compiler_params=pltpu.CompilerParams(
            dimension_semantics=("parallel", "parallel"),
            vmem_limit_bytes=vmem_limit_bytes,
        ),
        cost_estimate=pl.CostEstimate(
            flops=N * C * HW, transcendentals=0,
            bytes_accessed=2 * N * C * HW * elem + N * C * 4),
        input_output_aliases=({0: 0} if donate_x else {}),
    )(x, g)
    return out.reshape(N, C, H, W)


# --------------------------------------------------------------------------- #
# Pure-JAX reference mirroring the PyTorch forward (NCHW).
# --------------------------------------------------------------------------- #
def se_reference(x, w1, b1, w2, b2):
    N, C, H, W = x.shape
    S = w1.shape[0]
    pooled = jnp.mean(x, axis=(2, 3), keepdims=True)                     # (N, C, 1, 1)
    h = jnp.einsum("sc,ncij->nsij", w1.reshape(S, C), pooled) + b1.reshape(1, S, 1, 1)
    h = jax.nn.relu(h)
    g = jnp.einsum("cs,nsij->ncij", w2.reshape(C, S), h) + b2.reshape(1, C, 1, 1)
    g = jax.nn.sigmoid(g)
    return x * g


if __name__ == "__main__":
    # Small shapes consistent with the module: in_planes=8, se_planes=2.
    C, H, W, S = 8, 16, 16, 2

    key = jax.random.PRNGKey(0)
    kx, kw1, kb1, kw2, kb2 = jax.random.split(key, 5)

    w1 = 0.3 * jax.random.normal(kw1, (S, C, 1, 1), dtype=jnp.float32)
    b1 = 0.1 * jax.random.normal(kb1, (S,), dtype=jnp.float32)
    w2 = 0.3 * jax.random.normal(kw2, (C, S, 1, 1), dtype=jnp.float32)
    b2 = 0.1 * jax.random.normal(kb2, (C,), dtype=jnp.float32)

    # 1) Primary path, N=2 (Bn=1, grid of 2 parallel steps).
    x2 = jax.random.normal(kx, (2, C, H, W), dtype=jnp.float32)
    out = jax.block_until_ready(se_forward(x2, w1, b1, w2, b2))
    ref = se_reference(x2, w1, b1, w2, b2)
    np.testing.assert_allclose(np.asarray(out), np.asarray(ref), rtol=1e-5, atol=1e-5)

    # 2) Primary path with sample batching, N=4 (Bn=2, grid of 2 steps).
    x4 = jax.random.normal(kx, (4, C, H, W), dtype=jnp.float32)
    out4 = jax.block_until_ready(se_forward(x4, w1, b1, w2, b2))
    ref4 = se_reference(x4, w1, b1, w2, b2)
    np.testing.assert_allclose(np.asarray(out4), np.asarray(ref4), rtol=1e-5, atol=1e-5)

    # 3) Two-pass fallback path (forced, small HW tile to exercise accumulation).
    out_tp = jax.block_until_ready(
        se_forward(x2, w1, b1, w2, b2, force_two_pass=True, two_pass_tile_bytes=4096))
    np.testing.assert_allclose(np.asarray(out_tp), np.asarray(ref), rtol=1e-5, atol=1e-5)

    print("KERNEL_OK")
</pallas_src>

<mosaic_0001>
module attributes {stable_mosaic.version = 11 : i64} {
  func.func @_se_kernel(%arg0: i32, %arg1: memref<1x8x256xf32, #tpu.memory_space<vmem>>, %arg2: memref<8x2xf32, #tpu.memory_space<vmem>>, %arg3: memref<1x2xf32, #tpu.memory_space<vmem>>, %arg4: memref<8x2xf32, #tpu.memory_space<vmem>>, %arg5: memref<8x1xf32, #tpu.memory_space<vmem>>, %arg6: memref<1x8x256xf32, #tpu.memory_space<vmem>>) attributes {dimension_semantics = [#tpu.dimension_semantics<parallel>], iteration_bounds = array<i64: 2>, scalar_prefetch = 0 : i64, scratch_operands = 0 : i64, tpu.core_type = #tpu.core_type<tc>, window_params = [{transform_indices = @transform_0, window_bounds = array<i64: 1, 8, 256>}, {pipeline_mode = #tpu.pipeline_mode<synchronous>, transform_indices = @transform_1, window_bounds = array<i64: 8, 2>}, {pipeline_mode = #tpu.pipeline_mode<synchronous>, transform_indices = @transform_2, window_bounds = array<i64: 1, 2>}, {pipeline_mode = #tpu.pipeline_mode<synchronous>, transform_indices = @transform_3, window_bounds = array<i64: 8, 2>}, {pipeline_mode = #tpu.pipeline_mode<synchronous>, transform_indices = @transform_4, window_bounds = array<i64: 8, 1>}, {transform_indices = @transform_5, window_bounds = array<i64: 1, 8, 256>}]} {
    %c0 = arith.constant 0 : index
    %c0_0 = arith.constant 0 : index
    %c0_1 = arith.constant 0 : index
    %0 = vector.load %arg1[%c0, %c0_0, %c0_1] : memref<1x8x256xf32, #tpu.memory_space<vmem>>, vector<1x8x256xf32>
    %cst = arith.constant dense<0.000000e+00> : vector<1x8xf32>
    %1 = vector.multi_reduction <add>, %0, %cst [2] : vector<1x8x256xf32> to vector<1x8xf32>
    %2 = vector.shape_cast %1 : vector<1x8xf32> to vector<1x8x1xf32>
    %cst_2 = arith.constant 2.560000e+02 : f32
    %3 = vector.broadcast %cst_2 : f32 to vector<1x8x1xf32>
    %4 = arith.divf %2, %3 : vector<1x8x1xf32>
    %c0_3 = arith.constant 0 : index
    %c0_4 = arith.constant 0 : index
    %5 = vector.load %arg2[%c0_3, %c0_4] : memref<8x2xf32, #tpu.memory_space<vmem>>, vector<8x2xf32>
    %6 = vector.shape_cast %5 : vector<8x2xf32> to vector<1x8x2xf32>
    %7 = vector.broadcast %4 : vector<1x8x1xf32> to vector<1x8x2xf32>
    %8 = arith.mulf %6, %7 : vector<1x8x2xf32>
    %cst_5 = arith.constant dense<0.000000e+00> : vector<1x2xf32>
    %9 = vector.multi_reduction <add>, %8, %cst_5 [1] : vector<1x8x2xf32> to vector<1x2xf32>
    %10 = vector.shape_cast %9 : vector<1x2xf32> to vector<1x1x2xf32>
    %c0_6 = arith.constant 0 : index
    %c0_7 = arith.constant 0 : index
    %11 = vector.load %arg3[%c0_6, %c0_7] : memref<1x2xf32, #tpu.memory_space<vmem>>, vector<1x2xf32>
    %12 = vector.shape_cast %11 : vector<1x2xf32> to vector<1x1x2xf32>
    %13 = arith.addf %10, %12 : vector<1x1x2xf32>
    %cst_8 = arith.constant 0.000000e+00 : f32
    %14 = vector.broadcast %cst_8 : f32 to vector<1x1x2xf32>
    %15 = arith.maximumf %13, %14 : vector<1x1x2xf32>
    %c0_9 = arith.constant 0 : index
    %c0_10 = arith.constant 0 : index
    %16 = vector.load %arg4[%c0_9, %c0_10] : memref<8x2xf32, #tpu.memory_space<vmem>>, vector<8x2xf32>
    %17 = vector.shape_cast %16 : vector<8x2xf32> to vector<1x8x2xf32>
    %18 = vector.broadcast %15 : vector<1x1x2xf32> to vector<1x8x2xf32>
    %19 = arith.mulf %17, %18 : vector<1x8x2xf32>
    %cst_11 = arith.constant dense<0.000000e+00> : vector<1x8xf32>
    %20 = vector.multi_reduction <add>, %19, %cst_11 [2] : vector<1x8x2xf32> to vector<1x8xf32>
    %21 = vector.shape_cast %20 : vector<1x8xf32> to vector<1x8x1xf32>
    %c0_12 = arith.constant 0 : index
    %c0_13 = arith.constant 0 : index
    %22 = vector.load %arg5[%c0_12, %c0_13] : memref<8x1xf32, #tpu.memory_space<vmem>>, vector<8x1xf32>
    %23 = vector.shape_cast %22 : vector<8x1xf32> to vector<1x8x1xf32>
    %24 = arith.addf %21, %23 : vector<1x8x1xf32>
    %25 = arith.negf %24 : vector<1x8x1xf32>
    %26 = math.exp %25 : vector<1x8x1xf32>
    %cst_14 = arith.constant 1.000000e+00 : f32
    %27 = vector.broadcast %cst_14 : f32 to vector<1x8x1xf32>
    %28 = arith.addf %27, %26 : vector<1x8x1xf32>
    %29 = arith.divf %27, %28 : vector<1x8x1xf32>
    %30 = vector.broadcast %29 : vector<1x8x1xf32> to vector<1x8x256xf32>
    %31 = arith.mulf %0, %30 : vector<1x8x256xf32>
    %c0_15 = arith.constant 0 : index
    %c0_16 = arith.constant 0 : index
    %c0_17 = arith.constant 0 : index
    %32 = vector.load %arg6[%c0_15, %c0_16, %c0_17] : memref<1x8x256xf32, #tpu.memory_space<vmem>>, vector<1x8x256xf32>
    tpu.vector_store %arg6[%c0_15, %c0_16, %c0_17], %31 {strides = array<i32>} : memref<1x8x256xf32, #tpu.memory_space<vmem>>, vector<1x8x256xf32>,
    return
  }
  func.func @transform_0(%arg0: i32) -> (i32, i32, i32) {
    %c0_i32 = arith.constant 0 : i32
    %c0_i32_0 = arith.constant 0 : i32
    %c0_i32_1 = arith.constant 0 : i32
    return %arg0, %c0_i32, %c0_i32_0 : i32, i32, i32
  }
  func.func @transform_1(%arg0: i32) -> (i32, i32) {
    %c0_i32 = arith.constant 0 : i32
    %c0_i32_0 = arith.constant 0 : i32
    %c0_i32_1 = arith.constant 0 : i32
    return %c0_i32, %c0_i32_0 : i32, i32
  }
  func.func @transform_2(%arg0: i32) -> (i32, i32) {
    %c0_i32 = arith.constant 0 : i32
    %c0_i32_0 = arith.constant 0 : i32
    %c0_i32_1 = arith.constant 0 : i32
    return %c0_i32, %c0_i32_0 : i32, i32
  }
  func.func @transform_3(%arg0: i32) -> (i32, i32) {
    %c0_i32 = arith.constant 0 : i32
    %c0_i32_0 = arith.constant 0 : i32
    %c0_i32_1 = arith.constant 0 : i32
    return %c0_i32, %c0_i32_0 : i32, i32
  }
  func.func @transform_4(%arg0: i32) -> (i32, i32) {
    %c0_i32 = arith.constant 0 : i32
    %c0_i32_0 = arith.constant 0 : i32
    %c0_i32_1 = arith.constant 0 : i32
    return %c0_i32, %c0_i32_0 : i32, i32
  }
  func.func @transform_5(%arg0: i32) -> (i32, i32, i32) {
    %c0_i32 = arith.constant 0 : i32
    %c0_i32_0 = arith.constant 0 : i32
    %c0_i32_1 = arith.constant 0 : i32
    return %arg0, %c0_i32, %c0_i32_0 : i32, i32, i32
  }
}

</mosaic_0001>

<bundles_post_ra>
// kernel: tpu_custom_call.1
= control target key start
LH: loop header
LB: loop body
LE: loop exit
PB: predicated region body
PF: predicated region fallthrough
CT: control target
= control target key end

     0   :  { %10 = vsyncpa [#allocation3], 0  ;;  %s752_s0 = inlined_call_operand.hbm [shape: f32[2,8,256], index: 0, kind: input, shape index: {}]   ;;  %s753_s1 = inlined_call_operand.vmem [shape: f32[8,2], index: 1, kind: input, shape index: {}]   ;;  %s754_s2 = inlined_call_operand.vmem [shape: f32[1,2], index: 2, kind: input, shape index: {}]   ;;  %s755_s3 = inlined_call_operand.vmem [shape: f32[8,2], index: 3, kind: input, shape index: {}]   ;;  %s756_s4 = inlined_call_operand.vmem [shape: f32[8,1], index: 4, kind: input, shape index: {}]   ;;  %s757_s5 = inlined_call_operand.hbm [shape: f32[2,8,256], index: 5, kind: output, shape index: {}]  }
   0x1   :  { %12 = vsyncpa [#allocation3 + $0x1], 0 }
   0x2   :  { %13 = vsyncpa [#allocation4], 0 }
   0x3   :  { %15 = vsyncpa [#allocation4 + $0x1], 0  ;;  %s573_s18 = smov 0   ;;  %s575_s19 = smov 0  }
   0x4   :  { %s577_s20 = smov 0   ;;  %s579_s21 = smov 0  }
   0x5 LB: > { %s594_s22 = sadd.s32 4294967295, %s538_s21   ;;  %s372_s23 = sadd.s32 4294967294, %s538_s21   ;;  %s538_s21 = sphi %s579_s21, %s772_s21   ;;  %s534_s20 = sphi %s577_s20, %s771_s20   ;;  %s530_s19 = sphi %s575_s19, %s770_s19   ;;  %s526_s18 = sphi %s573_s18, %s769_s18  }
   0x6   : > { %s598_s24 = sadd.s32 1, %s538_s21   ;;  %s28_s25 = sadd.s32 1, %s534_s20 }
   0x7   : > { %s25_s26 = ssub.s32 %s538_s21, %s598_s24  ;;  %p35_p0 = scmp.ne.s32.totalorder %s534_s20, %s530_s19 }
   0x8   : > { %p26_p1 = scmp.eq.s32.totalorder %s25_s26, 0  ;;  %p36_p2 = scmp.eq.s32.totalorder %s538_s21, 0 }
   0x9   : > { %p41_p3 = scmp.ne.s32.totalorder %s530_s19, %s526_s18  ;;  %p42_p4 = scmp.eq.s32.totalorder %s594_s22, 0 }
   0xa   : > { %s610_s27 = scalar_select %p26_p1, %s534_s20, %s28_s25  }
   0xb   : > { %p612_p5 = por %p36_p2, %p35_p0  ;;  %p616_p6 = por %p42_p4, %p41_p3 }
   0xc   : > { %p149_p7 = scmp.eq.s32.totalorder %s594_s22, 1  ;;  %p155_p8 = scmp.eq.s32.totalorder %s372_s23, 1 }
   0xd   : > { %p401_p10 = scmp.lt.s32.totalorder %s538_s21, 2  ;;  %s187_s7 = sand.u32 1, %s534_s20  }
   0xe   : > { %p623_p11 = por %p149_p7, %p35_p0  ;;  %p627_p12 = por %p155_p8, %p41_p3 }
   0xf   : > { %s387_s8 = sshll.u32 %s538_s21, 8  ;;  %s375_s9 = sshll.u32 %s187_s7, 4 }
  0x10   : > { %s761_s30 = scalar_select %p623_p11, 1, 0 }
  0x11   : > { %s762_s6 = scalar_select %p627_p12, 1, 0 }
  0x12   : > { %s636_s12 = scalar_lea.hbm %s752_s0, %s387_s8  ;;  %s191_s13 = scalar_lea.vmem [#allocation2], %s375_s9 }
  0x13   : > { %s199_s14 = sshll.u32 %s191_s13, 4  ;;  %p640_p13 = pnand %p401_p10, %p612_p5  ;;  %s644_s14 = int_to_ptr.vmem [resolvable:$true] %s199_s14 }
  0x14   : > { %s188_s16 = scalar_lea.sflag [#allocation3], %s187_s7  ;;  %s442_s17 = scalar_lea.hbm %s636_s12, 256 }
  0x15   : > { %p443_p2 = scmp.ne.s32.totalorder %s636_s12, %s442_s17  ;;  %p444_p3 = pneg %p640_p13 }
  0x16   : > { %s447_s26 = scalar_lea.hbm %s752_s0, 512  ;;  %p448_p5 = scmp.lt.u32.totalorder %s636_s12, %s752_s0 }
  0x17   : > { %p445_p4 = pnand %p444_p3, %p443_p2  ;;  %p449_p8 = scmp.lt.u32.totalorder %s447_s26, %s442_s17 }
  0x18   : > { %p451_p9 = scmp.lt.u32.totalorder %s442_s17, %s636_s12 }
  0x19   : > { %p446_p7 = pneg %p445_p4  ;;  %p450_p10 = por %p449_p8, %p448_p5 }
  0x1b   : > { %p452_p0 = por %p451_p9, %p450_p10 }
  0x1d   : > { %p453_p1 = pnand %p452_p0, %p446_p7 }
  0x1f   : > { %456 = shalt.err (!%p453_p1)
}
  0x20   : > { %s457_s7 = scalar_lea.vmem %s644_s14, 256  ;;  %s540_s9 = smov [#allocation2]  }
  0x21   : > { %p458_p2 = scmp.ne.s32.totalorder %s644_s14, %s457_s7  ;;  %s462_s10 = sshll.u32 %s540_s9, 4  ;;  %s463_s10 = int_to_ptr.vmem [resolvable:$false] %s462_s10 }
  0x22   : > { %s464_s11 = scalar_lea.vmem %s463_s10, 512  ;;  %p465_p11 = scmp.lt.s32.totalorder %s644_s14, %s463_s10 }
  0x23   : > { %p460_p4 = pnand %p458_p2, %p444_p3  ;;  %p466_p5 = scmp.lt.s32.totalorder %s464_s11, %s457_s7 }
  0x25   : > { %p461_p12 = pneg %p460_p4  ;;  %p467_p8 = por %p466_p5, %p465_p11 }
  0x27   : > { %p468_p9 = pnand %p467_p8, %p461_p12 }
  0x29   : > { %471 = shalt.err (!%p468_p9)
}
  0x2a   : > { %396 = dma.hbm_to_vmem [thread:$0]  (!%p640_p13), %s636_s12, 256, %s644_s14, %s188_s16  }
  0x2b   : > { %p764_p0 = scmp.lt.s32.totalorder %s538_s21, 3  ;;  %p765_p1 = scmp.ge.s32.totalorder %s538_s21, 1 }
  0x2d   : > { %p205_p3 = pnand %p765_p1, %p764_p0 }
  0x2e   : > { %s678_s13 = sand.u32 (!%p205_p3), 1, %s530_s19  }
  0x2f   : > { %208 = sbr.rel (%p205_p3) target bundleno = 540 (0x21c), region = 40  ;;  %s379_s17 = sshll.u32 (!%p205_p3), %s678_s13, 4 }
  0x30   : > { %s211_s23 = scalar_lea.sflag (!%p205_p3), [#allocation3], %s678_s13  ;;  %s214_s15 = scalar_lea.vmem (!%p205_p3), [#allocation2], %s379_s17 }
  0x36   : > { %517 = dma.done.wait (%p616_p6), %s211_s23, 256  }
  0x37   : > { %519 = vsyncadd (%p616_p6), %s211_s23, 4294967040  ;;  %v241_v0 = vld [vmem:[%s214_s15] sm:$0xff]  ;;  %v242_v1 = vld [vmem:[%s214_s15 + $0x8] sm:$0xff]  ;;  %vm250_vm0 = vcmask 15360   ;;  %v262_v11 = vlaneseq  ;;  %v541_v24 = vmov 0   ;;  %s388_s7 = sshll.u32 %s594_s22, 8 }
  0x38   : > { %v243_v2 = vadd.f32 %v242_v1, %v241_v0  ;;  %v248_v3 = vld [vmem:[%s753_s1] sm:$0xff]  ;;  %436 = vset.pattern.permute.xlu1 %v541_v24  ;;  %437 = vset.pattern.permute.xlu0 %v541_v24  ;;  %s240_s9 = scalar_lea.vmem [#allocation5], %s379_s17  ;;  %s708_s15 = scalar_lea.hbm %s757_s5, %s388_s7 }
  0x39   : > { %v263_v14 = vshrl.u32 %v262_v11, 7  ;;  %v258_v15 = vld [vmem:[%s754_s2] sm:$0x1]  ;;  %s302_s10 = sshll.u32 %s240_s9, 4  ;;  %s288_s12 = scalar_lea.sflag [#allocation4], %s678_s13  ;;  %s710_s10 = int_to_ptr.vmem [resolvable:$true] %s302_s10 }
  0x3a   : > { %244 = vadd.xlane.f32.xlu0 %v243_v2  ;;  %v261_v20 = vld [vmem:[%s755_s3] sm:$0xff]  ;;  %s472_s22 = scalar_lea.vmem %s710_s10, 256  ;;  %p766_p11 = scmp.ne.s32.totalorder %s761_s30, 0 }
  0x3b   : > { %v264_v18 = vsub.s32 0, %v263_v14  ;;  %v270_v25 = vld [vmem:[%s756_s4] sm:$0xff]  ;;  %p473_p6 = scmp.ne.s32.totalorder %s710_s10, %s472_s22  ;;  %s542_s17 = smov [#allocation5]  }
  0x3c   : > { %s476_s14 = sshll.u32 %s542_s17, 4  ;;  %s477_s14 = int_to_ptr.vmem [resolvable:$false] %s476_s14 }
  0x3d   : > { %p474_p12 = pnand %p473_p6, %p766_p11  ;;  %s478_s29 = scalar_lea.vmem %s477_s14, 512 }
  0x3e   : > { %p479_p7 = scmp.lt.s32.totalorder %s710_s10, %s477_s14  ;;  %p480_p10 = scmp.lt.s32.totalorder %s478_s29, %s472_s22 }
  0x3f   : > { %p475_p13 = pneg %p474_p12 }
  0x40   : > { %p481_p2 = por %p480_p10, %p479_p7 }
  0x42   : > { %p482_p4 = pnand %p481_p2, %p475_p13 }
  0xc7   : > { %v245_v4 = vpop.xlane.xlu0 %244 }
  0xc8   : > { %v247_v5 = vmul.f32 0.00390625, %v245_v4 }
  0xca   : > { %v249_v6 = vmul.f32 %v248_v3, %v247_v5 }
  0xcc   : > { %v251_v7 = vsel %vm250_vm0, %v249_v6, 0.0 }
  0xcd   : > { %v252_v8 = vrot.slane %v251_v7, 4 }
  0xcf   : > { %v253_v9 = vadd.f32 %v252_v8, %v251_v7 }
  0xd1   : > { %v254_v10 = vrot.slane %v253_v9, 2 }
  0xd3   : > { %v255_v12 = vadd.f32 %v254_v10, %v253_v9 }
  0xd5   : > { %v256_v13 = vrot.slane %v255_v12, 1 }
  0xd7   : > { %v257_v16 = vadd.f32 %v256_v13, %v255_v12 }
  0xd9   : > { %v259_v17 = vadd.f32 %v258_v15, %v257_v16 }
  0xdb   : > { %v260_v19 = vmax.f32 %v259_v17, 0.0 }
  0xdd   : > { %v265_v21 = vrot.slane %v260_v19, %v264_v18 }
  0xdf   : > { %v266_v22 = vmul.f32 %v265_v21, %v261_v20 }
  0xe1   : > { %v267_v23 = vsel %vm250_vm0, %v266_v22, 0.0 }
  0xe2   : > { %268 = vadd.xlane.f32.xlu0 %v267_v23 }
 0x16f   : > { %v269_v26 = vpop.xlane.xlu0 %268 }
 0x170   : > { %v271_v27 = vadd.f32 %v270_v25, %v269_v26 }
 0x172   : > { %v381_v28 = vmul.f32 -1.442695, %v271_v27 }
 0x174   : > { %438 = vpow2.f32 %v381_v28 }
 0x17e   : > { %v439_v29 = vpop.eup %438 }
 0x17f   : > { %v275_v30 = vadd.f32 1.0, %v439_v29 }
 0x181   : > { %440 = vrcp.f32 %v275_v30 }
 0x18b   : > { %v441_v31 = vpop.eup %440 }
 0x18c   : > { %280 = vperm.xlu1 %436, %v441_v31  }
 0x20b   : > { %v281_v32 = vpop.permute.xlu1 %280 }
 0x20c   : > { %v283_v33 = vmul.f32 %v281_v32, %v241_v0  ;;  %v284_v34 = vmul.f32 %v281_v32, %v242_v1 }
 0x20e   : > { %285 = vst [vmem:[%s240_s9] sm:$0xff] %v283_v33  ;;  %286 = vst [vmem:[%s240_s9 + $0x8] sm:$0xff] %v284_v34 }
 0x20f   : > { %485 = shalt.err (!%p482_p4)
}
 0x210   : > { %s486_s13 = scalar_lea.hbm %s708_s15, 256  ;;  %s490_s26 = scalar_lea.hbm %s757_s5, 512 }
 0x211   : > { %p487_p5 = scmp.ne.s32.totalorder %s708_s15, %s486_s13  ;;  %p491_p0 = scmp.lt.u32.totalorder %s708_s15, %s757_s5 }
 0x212   : > { %p492_p1 = scmp.lt.u32.totalorder %s490_s26, %s486_s13  ;;  %p494_p6 = scmp.lt.u32.totalorder %s486_s13, %s708_s15 }
 0x213   : > { %p488_p8 = pnand %p487_p5, %p766_p11 }
 0x214   : > { %p493_p3 = por %p492_p1, %p491_p0 }
 0x215   : > { %p489_p9 = pneg %p488_p8 }
 0x216   : > { %p495_p12 = por %p494_p6, %p493_p3 }
 0x218   : > { %p496_p13 = pnand %p495_p12, %p489_p9 }
 0x21a   : > { %499 = shalt.err (!%p496_p13)
}
 0x21b   : > { %391 = dma.vmem_to_hbm [thread:$0]  (%p766_p11), %s710_s10, 256, %s708_s15, %s288_s12  }
 0x21c PF: > { %s314_s7 = sand.u32 1, %s526_s18   ;;  %p767_p7 = scmp.ne.s32.totalorder %s762_s6, 0 }
 0x21d   : > { %p768_p10 = scmp.ge.s32.totalorder %s538_s21, 2  ;;  %s315_s9 = scalar_lea.sflag [#allocation4], %s314_s7 }
 0x21f   : > { %p398_p2 = pnand %p768_p10, %p767_p7 }
 0x221   : > { %521 = dma.done.wait (!%p398_p2), %s315_s9, 256  }
 0x222   : > { %523 = vsyncadd (!%p398_p2), %s315_s9, 4294967040  ;;  %p18_p4 = scmp.ge.s32.totalorder %s598_s24, 4   ;;  %s769_s18 = smov %s530_s19 }
 0x223   : > { %s770_s19 = smov %s534_s20  ;;  %s771_s20 = smov %s610_s27 }
 0x224   : > { %s772_s21 = smov %s598_s24  ;;  %20 = sbr.rel (!%p18_p4) target bundleno = 5 (0x5), region = 85 }
 0x22b   :  { %320 = vsyncpa [#allocation3], 1 }
 0x22c   :  { %322 = vsyncpa [#allocation3 + $0x1], 1 }
 0x22d   :  { %323 = vsyncpa [#allocation4], 1 }
 0x22e   :  { %325 = vsyncpa [#allocation4 + $0x1], 1 }

</bundles_post_ra>
